<compile_context>
chip_gen: v7x
topology: tpu7x:2x2x1
jax: 0.10.0
libtpu: 0.0.40
codegen_flags: <defaults>
</compile_context>

<pallas_src>
import functools

import jax
import jax.numpy as jnp
from jax.experimental import pallas as pl
from jax.experimental.pallas import tpu as pltpu


def _upsample_matrix(size: int) -> jnp.ndarray:
    """(2*size, size) f32 matrix M such that M @ v is the 2x bilinear upsample of v
    (align_corners=False, edge-clamped) — i.e. the fixed 0.25/0.75 two-tap filter."""
    out = 2 * size
    o = jnp.arange(out, dtype=jnp.float32)
    src = jnp.clip((o + 0.5) / 2.0 - 0.5, 0.0, float(size - 1))
    i0 = jnp.floor(src).astype(jnp.int32)
    i1 = jnp.minimum(i0 + 1, size - 1)
    w1 = src - i0.astype(jnp.float32)           # in {0.0, 0.25, 0.75}
    w0 = 1.0 - w1
    return (jax.nn.one_hot(i0, size, dtype=jnp.float32) * w0[:, None]
            + jax.nn.one_hot(i1, size, dtype=jnp.float32) * w1[:, None])


def _upsample_kernel(tb, x_ref, uh_ref, uw_ref, o_ref):
    uh = uh_ref[...]                            # (2H, H)  f32 constant
    uw = uw_ref[...]                            # (W, 2W)  f32 constant

    def one_plane(b):
        x = x_ref[b].astype(jnp.float32)        # compute in f32 (CastUpsample.float())
        y = jnp.dot(uh, x, preferred_element_type=jnp.float32)   # (2H, W)
        o = jnp.dot(y, uw, preferred_element_type=jnp.float32)   # (2H, 2W)
        o_ref[b] = o.astype(o_ref.dtype)        # cast back to input dtype

    if tb <= 8:                                 # static unroll for small blocks
        for b in range(tb):
            one_plane(b)
    else:
        def body(b, carry):
            one_plane(b)
            return carry
        jax.lax.fori_loop(0, tb, body, 0)


def cast_upsample(x):
    """CastUpsample.forward: 2x bilinear (align_corners=False) in f32, cast back."""
    n, c, h, w = x.shape
    nc = n * c
    x3 = x.reshape(nc, h, w)

    uh = _upsample_matrix(h)                    # (2H, H)
    uw = _upsample_matrix(w).T                  # (W, 2W)

    # How many (H, W) planes per grid step: keep (input + output) block ~2 MiB so
    # double-buffered blocks stay far below the scoped VMEM limit on v5e/v6e/v7x,
    # while avoiding tiny per-step work (0.35 us grid overhead).
    itemsize = jnp.dtype(x.dtype).itemsize
    plane_bytes = h * w * itemsize + 4 * h * w * itemsize
    tb = max(1, min(nc, (2 * 1024 * 1024) // max(plane_bytes, 1)))
    while nc % tb:                              # no padding of N*C needed
        tb -= 1
    grid = (nc // tb,)
    # TODO(synk): for very large planes (single-plane block > ~8 MiB) also tile H
    # with 1-row halos instead of relying on tb == 1.

    out = pl.pallas_call(
        functools.partial(_upsample_kernel, tb),
        out_shape=jax.ShapeDtypeStruct((nc, 2 * h, 2 * w), x.dtype),
        grid=grid,
        in_specs=[
            pl.BlockSpec((tb, h, w), lambda i: (i, 0, 0)),
            pl.BlockSpec((2 * h, h), lambda i: (0, 0)),
            pl.BlockSpec((w, 2 * w), lambda i: (0, 0)),
        ],
        out_specs=pl.BlockSpec((tb, 2 * h, 2 * w), lambda i: (i, 0, 0)),
        compiler_params=pltpu.CompilerParams(
            dimension_semantics=("parallel",),
            vmem_limit_bytes=32 * 1024 * 1024,
        ),
    )(x3, uh, uw)
    return out.reshape(n, c, 2 * h, 2 * w)


# ------------------------- pure-JAX reference (check) ------------------------

def _ref_cast_upsample(x):
    xf = x.astype(jnp.float32)

    def interp(arr, axis):
        size = arr.shape[axis]
        idx = jnp.arange(2 * size)
        src = jnp.clip((idx + 0.5) / 2.0 - 0.5, 0.0, size - 1.0)
        i0 = jnp.floor(src).astype(jnp.int32)
        i1 = jnp.minimum(i0 + 1, size - 1)
        w1 = (src - i0).astype(jnp.float32)
        a0 = jnp.take(arr, i0, axis=axis)
        a1 = jnp.take(arr, i1, axis=axis)
        shp = [1] * arr.ndim
        shp[axis] = 2 * size
        return a0 * (1.0 - w1).reshape(shp) + a1 * w1.reshape(shp)

    return interp(interp(xf, 2), 3).astype(x.dtype)


if __name__ == "__main__":
    key = jax.random.PRNGKey(0)
    # bf16 input exercises the "cast up to f32, compute, cast back" semantics.
    x = jax.random.normal(key, (2, 4, 16, 16), jnp.float32).astype(jnp.bfloat16)

    y = jax.jit(cast_upsample)(x)
    y = jax.block_until_ready(y)

    assert y.shape == (2, 4, 32, 32), y.shape
    assert y.dtype == x.dtype, y.dtype
    y32 = y.astype(jnp.float32)
    assert bool(jnp.all(jnp.isfinite(y32)))

    y_ref = _ref_cast_upsample(x).astype(jnp.float32)
    max_err = float(jnp.max(jnp.abs(y32 - y_ref)))
    assert max_err <= 5e-2, max_err            # within one bf16 ulp of the reference

    print("KERNEL_OK")
</pallas_src>

<mosaic_0001>
module attributes {stable_mosaic.version = 11 : i64} {
  func.func @_upsample_kernel(%arg0: i32, %arg1: memref<8x16x16xbf16, #tpu.memory_space<vmem>>, %arg2: memref<32x16xf32, #tpu.memory_space<vmem>>, %arg3: memref<16x32xf32, #tpu.memory_space<vmem>>, %arg4: memref<8x32x32xbf16, #tpu.memory_space<vmem>>) attributes {dimension_semantics = [#tpu.dimension_semantics<parallel>], iteration_bounds = array<i64: 1>, scalar_prefetch = 0 : i64, scratch_operands = 0 : i64, tpu.core_type = #tpu.core_type<tc>, window_params = [{transform_indices = @transform_0, window_bounds = array<i64: 8, 16, 16>}, {pipeline_mode = #tpu.pipeline_mode<synchronous>, transform_indices = @transform_1, window_bounds = array<i64: 32, 16>}, {pipeline_mode = #tpu.pipeline_mode<synchronous>, transform_indices = @transform_2, window_bounds = array<i64: 16, 32>}, {transform_indices = @transform_3, window_bounds = array<i64: 8, 32, 32>}]} {
    %c0 = arith.constant 0 : index
    %c0_0 = arith.constant 0 : index
    %0 = vector.load %arg2[%c0, %c0_0] : memref<32x16xf32, #tpu.memory_space<vmem>>, vector<32x16xf32>
    %c0_1 = arith.constant 0 : index
    %c0_2 = arith.constant 0 : index
    %1 = vector.load %arg3[%c0_1, %c0_2] : memref<16x32xf32, #tpu.memory_space<vmem>>, vector<16x32xf32>
    %c0_3 = arith.constant 0 : index
    %c0_4 = arith.constant 0 : index
    %c0_5 = arith.constant 0 : index
    %2 = vector.load %arg1[%c0_3, %c0_4, %c0_5] : memref<8x16x16xbf16, #tpu.memory_space<vmem>>, vector<1x16x16xbf16>
    %3 = vector.shape_cast %2 : vector<1x16x16xbf16> to vector<16x16xbf16>
    %4 = arith.extf %3 : vector<16x16xbf16> to vector<16x16xf32>
    %cst = arith.constant dense<0.000000e+00> : vector<32x16xf32>
    %5 = tpu.matmul %0, %4, %cst {dimension_numbers = #tpu.dot_dimension_numbers<[1], [0], [0], [1], [0, 0, 1, 1], [], []>} : vector<32x16xf32>, vector<16x16xf32>, vector<32x16xf32> -> vector<32x16xf32>
    %cst_6 = arith.constant dense<0.000000e+00> : vector<32x32xf32>
    %6 = tpu.matmul %5, %1, %cst_6 {dimension_numbers = #tpu.dot_dimension_numbers<[1], [0], [0], [1], [0, 0, 1, 1], [], []>} : vector<32x16xf32>, vector<16x32xf32>, vector<32x32xf32> -> vector<32x32xf32>
    %7 = arith.truncf %6 : vector<32x32xf32> to vector<32x32xbf16>
    %c0_7 = arith.constant 0 : index
    %c0_8 = arith.constant 0 : index
    %c0_9 = arith.constant 0 : index
    %8 = vector.load %arg4[%c0_7, %c0_8, %c0_9] : memref<8x32x32xbf16, #tpu.memory_space<vmem>>, vector<1x32x32xbf16>
    %9 = vector.shape_cast %8 : vector<1x32x32xbf16> to vector<32x32xbf16>
    %10 = vector.shape_cast %7 : vector<32x32xbf16> to vector<1x32x32xbf16>
    tpu.vector_store %arg4[%c0_7, %c0_8, %c0_9], %10 {strides = array<i32>} : memref<8x32x32xbf16, #tpu.memory_space<vmem>>, vector<1x32x32xbf16>,
    %c1 = arith.constant 1 : index
    %c0_10 = arith.constant 0 : index
    %c0_11 = arith.constant 0 : index
    %11 = vector.load %arg1[%c1, %c0_10, %c0_11] : memref<8x16x16xbf16, #tpu.memory_space<vmem>>, vector<1x16x16xbf16>
    %12 = vector.shape_cast %11 : vector<1x16x16xbf16> to vector<16x16xbf16>
    %13 = arith.extf %12 : vector<16x16xbf16> to vector<16x16xf32>
    %cst_12 = arith.constant dense<0.000000e+00> : vector<32x16xf32>
    %14 = tpu.matmul %0, %13, %cst_12 {dimension_numbers = #tpu.dot_dimension_numbers<[1], [0], [0], [1], [0, 0, 1, 1], [], []>} : vector<32x16xf32>, vector<16x16xf32>, vector<32x16xf32> -> vector<32x16xf32>
    %cst_13 = arith.constant dense<0.000000e+00> : vector<32x32xf32>
    %15 = tpu.matmul %14, %1, %cst_13 {dimension_numbers = #tpu.dot_dimension_numbers<[1], [0], [0], [1], [0, 0, 1, 1], [], []>} : vector<32x16xf32>, vector<16x32xf32>, vector<32x32xf32> -> vector<32x32xf32>
    %16 = arith.truncf %15 : vector<32x32xf32> to vector<32x32xbf16>
    %c1_14 = arith.constant 1 : index
    %c0_15 = arith.constant 0 : index
    %c0_16 = arith.constant 0 : index
    %17 = vector.load %arg4[%c1_14, %c0_15, %c0_16] : memref<8x32x32xbf16, #tpu.memory_space<vmem>>, vector<1x32x32xbf16>
    %18 = vector.shape_cast %17 : vector<1x32x32xbf16> to vector<32x32xbf16>
    %19 = vector.shape_cast %16 : vector<32x32xbf16> to vector<1x32x32xbf16>
    tpu.vector_store %arg4[%c1_14, %c0_15, %c0_16], %19 {strides = array<i32>} : memref<8x32x32xbf16, #tpu.memory_space<vmem>>, vector<1x32x32xbf16>,
    %c2 = arith.constant 2 : index
    %c0_17 = arith.constant 0 : index
    %c0_18 = arith.constant 0 : index
    %20 = vector.load %arg1[%c2, %c0_17, %c0_18] : memref<8x16x16xbf16, #tpu.memory_space<vmem>>, vector<1x16x16xbf16>
    %21 = vector.shape_cast %20 : vector<1x16x16xbf16> to vector<16x16xbf16>
    %22 = arith.extf %21 : vector<16x16xbf16> to vector<16x16xf32>
    %cst_19 = arith.constant dense<0.000000e+00> : vector<32x16xf32>
    %23 = tpu.matmul %0, %22, %cst_19 {dimension_numbers = #tpu.dot_dimension_numbers<[1], [0], [0], [1], [0, 0, 1, 1], [], []>} : vector<32x16xf32>, vector<16x16xf32>, vector<32x16xf32> -> vector<32x16xf32>
    %cst_20 = arith.constant dense<0.000000e+00> : vector<32x32xf32>
    %24 = tpu.matmul %23, %1, %cst_20 {dimension_numbers = #tpu.dot_dimension_numbers<[1], [0], [0], [1], [0, 0, 1, 1], [], []>} : vector<32x16xf32>, vector<16x32xf32>, vector<32x32xf32> -> vector<32x32xf32>
    %25 = arith.truncf %24 : vector<32x32xf32> to vector<32x32xbf16>
    %c2_21 = arith.constant 2 : index
    %c0_22 = arith.constant 0 : index
    %c0_23 = arith.constant 0 : index
    %26 = vector.load %arg4[%c2_21, %c0_22, %c0_23] : memref<8x32x32xbf16, #tpu.memory_space<vmem>>, vector<1x32x32xbf16>
    %27 = vector.shape_cast %26 : vector<1x32x32xbf16> to vector<32x32xbf16>
    %28 = vector.shape_cast %25 : vector<32x32xbf16> to vector<1x32x32xbf16>
    tpu.vector_store %arg4[%c2_21, %c0_22, %c0_23], %28 {strides = array<i32>} : memref<8x32x32xbf16, #tpu.memory_space<vmem>>, vector<1x32x32xbf16>,
    %c3 = arith.constant 3 : index
    %c0_24 = arith.constant 0 : index
    %c0_25 = arith.constant 0 : index
    %29 = vector.load %arg1[%c3, %c0_24, %c0_25] : memref<8x16x16xbf16, #tpu.memory_space<vmem>>, vector<1x16x16xbf16>
    %30 = vector.shape_cast %29 : vector<1x16x16xbf16> to vector<16x16xbf16>
    %31 = arith.extf %30 : vector<16x16xbf16> to vector<16x16xf32>
    %cst_26 = arith.constant dense<0.000000e+00> : vector<32x16xf32>
    %32 = tpu.matmul %0, %31, %cst_26 {dimension_numbers = #tpu.dot_dimension_numbers<[1], [0], [0], [1], [0, 0, 1, 1], [], []>} : vector<32x16xf32>, vector<16x16xf32>, vector<32x16xf32> -> vector<32x16xf32>
    %cst_27 = arith.constant dense<0.000000e+00> : vector<32x32xf32>
    %33 = tpu.matmul %32, %1, %cst_27 {dimension_numbers = #tpu.dot_dimension_numbers<[1], [0], [0], [1], [0, 0, 1, 1], [], []>} : vector<32x16xf32>, vector<16x32xf32>, vector<32x32xf32> -> vector<32x32xf32>
    %34 = arith.truncf %33 : vector<32x32xf32> to vector<32x32xbf16>
    %c3_28 = arith.constant 3 : index
    %c0_29 = arith.constant 0 : index
    %c0_30 = arith.constant 0 : index
    %35 = vector.load %arg4[%c3_28, %c0_29, %c0_30] : memref<8x32x32xbf16, #tpu.memory_space<vmem>>, vector<1x32x32xbf16>
    %36 = vector.shape_cast %35 : vector<1x32x32xbf16> to vector<32x32xbf16>
    %37 = vector.shape_cast %34 : vector<32x32xbf16> to vector<1x32x32xbf16>
    tpu.vector_store %arg4[%c3_28, %c0_29, %c0_30], %37 {strides = array<i32>} : memref<8x32x32xbf16, #tpu.memory_space<vmem>>, vector<1x32x32xbf16>,
    %c4 = arith.constant 4 : index
    %c0_31 = arith.constant 0 : index
    %c0_32 = arith.constant 0 : index
    %38 = vector.load %arg1[%c4, %c0_31, %c0_32] : memref<8x16x16xbf16, #tpu.memory_space<vmem>>, vector<1x16x16xbf16>
    %39 = vector.shape_cast %38 : vector<1x16x16xbf16> to vector<16x16xbf16>
    %40 = arith.extf %39 : vector<16x16xbf16> to vector<16x16xf32>
    %cst_33 = arith.constant dense<0.000000e+00> : vector<32x16xf32>
    %41 = tpu.matmul %0, %40, %cst_33 {dimension_numbers = #tpu.dot_dimension_numbers<[1], [0], [0], [1], [0, 0, 1, 1], [], []>} : vector<32x16xf32>, vector<16x16xf32>, vector<32x16xf32> -> vector<32x16xf32>
    %cst_34 = arith.constant dense<0.000000e+00> : vector<32x32xf32>
    %42 = tpu.matmul %41, %1, %cst_34 {dimension_numbers = #tpu.dot_dimension_numbers<[1], [0], [0], [1], [0, 0, 1, 1], [], []>} : vector<32x16xf32>, vector<16x32xf32>, vector<32x32xf32> -> vector<32x32xf32>
    %43 = arith.truncf %42 : vector<32x32xf32> to vector<32x32xbf16>
    %c4_35 = arith.constant 4 : index
    %c0_36 = arith.constant 0 : index
    %c0_37 = arith.constant 0 : index
    %44 = vector.load %arg4[%c4_35, %c0_36, %c0_37] : memref<8x32x32xbf16, #tpu.memory_space<vmem>>, vector<1x32x32xbf16>
    %45 = vector.shape_cast %44 : vector<1x32x32xbf16> to vector<32x32xbf16>
    %46 = vector.shape_cast %43 : vector<32x32xbf16> to vector<1x32x32xbf16>
    tpu.vector_store %arg4[%c4_35, %c0_36, %c0_37], %46 {strides = array<i32>} : memref<8x32x32xbf16, #tpu.memory_space<vmem>>, vector<1x32x32xbf16>,
    %c5 = arith.constant 5 : index
    %c0_38 = arith.constant 0 : index
    %c0_39 = arith.constant 0 : index
    %47 = vector.load %arg1[%c5, %c0_38, %c0_39] : memref<8x16x16xbf16, #tpu.memory_space<vmem>>, vector<1x16x16xbf16>
    %48 = vector.shape_cast %47 : vector<1x16x16xbf16> to vector<16x16xbf16>
    %49 = arith.extf %48 : vector<16x16xbf16> to vector<16x16xf32>
    %cst_40 = arith.constant dense<0.000000e+00> : vector<32x16xf32>
    %50 = tpu.matmul %0, %49, %cst_40 {dimension_numbers = #tpu.dot_dimension_numbers<[1], [0], [0], [1], [0, 0, 1, 1], [], []>} : vector<32x16xf32>, vector<16x16xf32>, vector<32x16xf32> -> vector<32x16xf32>
    %cst_41 = arith.constant dense<0.000000e+00> : vector<32x32xf32>
    %51 = tpu.matmul %50, %1, %cst_41 {dimension_numbers = #tpu.dot_dimension_numbers<[1], [0], [0], [1], [0, 0, 1, 1], [], []>} : vector<32x16xf32>, vector<16x32xf32>, vector<32x32xf32> -> vector<32x32xf32>
    %52 = arith.truncf %51 : vector<32x32xf32> to vector<32x32xbf16>
    %c5_42 = arith.constant 5 : index
    %c0_43 = arith.constant 0 : index
    %c0_44 = arith.constant 0 : index
    %53 = vector.load %arg4[%c5_42, %c0_43, %c0_44] : memref<8x32x32xbf16, #tpu.memory_space<vmem>>, vector<1x32x32xbf16>
    %54 = vector.shape_cast %53 : vector<1x32x32xbf16> to vector<32x32xbf16>
    %55 = vector.shape_cast %52 : vector<32x32xbf16> to vector<1x32x32xbf16>
    tpu.vector_store %arg4[%c5_42, %c0_43, %c0_44], %55 {strides = array<i32>} : memref<8x32x32xbf16, #tpu.memory_space<vmem>>, vector<1x32x32xbf16>,
    %c6 = arith.constant 6 : index
    %c0_45 = arith.constant 0 : index
    %c0_46 = arith.constant 0 : index
    %56 = vector.load %arg1[%c6, %c0_45, %c0_46] : memref<8x16x16xbf16, #tpu.memory_space<vmem>>, vector<1x16x16xbf16>
    %57 = vector.shape_cast %56 : vector<1x16x16xbf16> to vector<16x16xbf16>
    %58 = arith.extf %57 : vector<16x16xbf16> to vector<16x16xf32>
    %cst_47 = arith.constant dense<0.000000e+00> : vector<32x16xf32>
    %59 = tpu.matmul %0, %58, %cst_47 {dimension_numbers = #tpu.dot_dimension_numbers<[1], [0], [0], [1], [0, 0, 1, 1], [], []>} : vector<32x16xf32>, vector<16x16xf32>, vector<32x16xf32> -> vector<32x16xf32>
    %cst_48 = arith.constant dense<0.000000e+00> : vector<32x32xf32>
    %60 = tpu.matmul %59, %1, %cst_48 {dimension_numbers = #tpu.dot_dimension_numbers<[1], [0], [0], [1], [0, 0, 1, 1], [], []>} : vector<32x16xf32>, vector<16x32xf32>, vector<32x32xf32> -> vector<32x32xf32>
    %61 = arith.truncf %60 : vector<32x32xf32> to vector<32x32xbf16>
    %c6_49 = arith.constant 6 : index
    %c0_50 = arith.constant 0 : index
    %c0_51 = arith.constant 0 : index
    %62 = vector.load %arg4[%c6_49, %c0_50, %c0_51] : memref<8x32x32xbf16, #tpu.memory_space<vmem>>, vector<1x32x32xbf16>
    %63 = vector.shape_cast %62 : vector<1x32x32xbf16> to vector<32x32xbf16>
    %64 = vector.shape_cast %61 : vector<32x32xbf16> to vector<1x32x32xbf16>
    tpu.vector_store %arg4[%c6_49, %c0_50, %c0_51], %64 {strides = array<i32>} : memref<8x32x32xbf16, #tpu.memory_space<vmem>>, vector<1x32x32xbf16>,
    %c7 = arith.constant 7 : index
    %c0_52 = arith.constant 0 : index
    %c0_53 = arith.constant 0 : index
    %65 = vector.load %arg1[%c7, %c0_52, %c0_53] : memref<8x16x16xbf16, #tpu.memory_space<vmem>>, vector<1x16x16xbf16>
    %66 = vector.shape_cast %65 : vector<1x16x16xbf16> to vector<16x16xbf16>
    %67 = arith.extf %66 : vector<16x16xbf16> to vector<16x16xf32>
    %cst_54 = arith.constant dense<0.000000e+00> : vector<32x16xf32>
    %68 = tpu.matmul %0, %67, %cst_54 {dimension_numbers = #tpu.dot_dimension_numbers<[1], [0], [0], [1], [0, 0, 1, 1], [], []>} : vector<32x16xf32>, vector<16x16xf32>, vector<32x16xf32> -> vector<32x16xf32>
    %cst_55 = arith.constant dense<0.000000e+00> : vector<32x32xf32>
    %69 = tpu.matmul %68, %1, %cst_55 {dimension_numbers = #tpu.dot_dimension_numbers<[1], [0], [0], [1], [0, 0, 1, 1], [], []>} : vector<32x16xf32>, vector<16x32xf32>, vector<32x32xf32> -> vector<32x32xf32>
    %70 = arith.truncf %69 : vector<32x32xf32> to vector<32x32xbf16>
    %c7_56 = arith.constant 7 : index
    %c0_57 = arith.constant 0 : index
    %c0_58 = arith.constant 0 : index
    %71 = vector.load %arg4[%c7_56, %c0_57, %c0_58] : memref<8x32x32xbf16, #tpu.memory_space<vmem>>, vector<1x32x32xbf16>
    %72 = vector.shape_cast %71 : vector<1x32x32xbf16> to vector<32x32xbf16>
    %73 = vector.shape_cast %70 : vector<32x32xbf16> to vector<1x32x32xbf16>
    tpu.vector_store %arg4[%c7_56, %c0_57, %c0_58], %73 {strides = array<i32>} : memref<8x32x32xbf16, #tpu.memory_space<vmem>>, vector<1x32x32xbf16>,
    return
  }
  func.func @transform_0(%arg0: i32) -> (i32, i32, i32) {
    %c0_i32 = arith.constant 0 : i32
    %c0_i32_0 = arith.constant 0 : i32
    %c0_i32_1 = arith.constant 0 : i32
    return %arg0, %c0_i32, %c0_i32_0 : i32, i32, i32
  }
  func.func @transform_1(%arg0: i32) -> (i32, i32) {
    %c0_i32 = arith.constant 0 : i32
    %c0_i32_0 = arith.constant 0 : i32
    %c0_i32_1 = arith.constant 0 : i32
    return %c0_i32, %c0_i32_0 : i32, i32
  }
  func.func @transform_2(%arg0: i32) -> (i32, i32) {
    %c0_i32 = arith.constant 0 : i32
    %c0_i32_0 = arith.constant 0 : i32
    %c0_i32_1 = arith.constant 0 : i32
    return %c0_i32, %c0_i32_0 : i32, i32
  }
  func.func @transform_3(%arg0: i32) -> (i32, i32, i32) {
    %c0_i32 = arith.constant 0 : i32
    %c0_i32_0 = arith.constant 0 : i32
    %c0_i32_1 = arith.constant 0 : i32
    return %arg0, %c0_i32, %c0_i32_0 : i32, i32, i32
  }
}

</mosaic_0001>

<bundles_post_ra>
// kernel: cast_upsample.1
= control target key start
LH: loop header
LB: loop body
LE: loop exit
PB: predicated region body
PF: predicated region fallthrough
CT: control target
= control target key end

     0   :  { %vm25_vm0 = vcmask 130048   ;;  %s2442_s0 = inlined_call_operand.vmem [shape: bf16[8,16,16], index: 0, kind: input, shape index: {}]   ;;  %s2443_s1 = inlined_call_operand.vmem [shape: f32[32,16], index: 1, kind: input, shape index: {}]   ;;  %s2444_s2 = inlined_call_operand.vmem [shape: f32[16,32], index: 2, kind: input, shape index: {}]   ;;  %s2445_s3 = inlined_call_operand.hbm [shape: bf16[8,32,32], index: 3, kind: output, shape index: {}]  }
   0x1   :  { %v1856_v0 = vld [vmem:[%s2442_s0] sm:$0xff]   ;;  %v1887_v2 = vld [vmem:[%s2442_s0 + $0x8] sm:$0xff]   ;;  %v17_v4 = vld [vmem:[%s2443_s1 + $0x10] sm:$0xff] }
   0x2   :  { %v2270_v1 = vld [vmem:[%s2443_s1] sm:$0xff]  ;;  %2151 = vmatprep.subr.bf16.mxu0 %v1856_v0  ;;  %v16_v3 = vld [vmem:[%s2443_s1 + $0x8] sm:$0xff]  ;;  %v1888_v5 = vld [vmem:[%s2442_s0 + $0x10] sm:$0xff]  }
   0x3   :  { %1994 = vmatprep.mubr.msk.f32.mxu0 %vm25_vm0, %v2270_v1  ;;  %2153 = vmatpush3.bf16.msra.mxu0 %v1856_v0  ;;  %v19_v6 = vld [vmem:[%s2444_s2] sm:$0xff]  ;;  %v20_v7 = vld [vmem:[%s2444_s2 + $0x8] sm:$0xff] }
   0x4   :  { %2159 = vmatprep.subr.bf16.mxu0 %v1887_v2 }
   0x5   :  { %8 = vsyncpa [#allocation3], 0  ;;  %v2293_v8 = vpack.c.bf16 %v20_v7, %v19_v6  ;;  %v18_v9 = vld [vmem:[%s2443_s1 + $0x18] sm:$0xff]  ;;  %v1890_v11 = vld [vmem:[%s2442_s0 + $0x20] sm:$0xff]   ;;  %vm236_vm1 = vcmask 257024  }
   0x6   :  { %1995 = vmatmul.mubr.msk.f32.vlgmr.msra.gmra.mrb[0].mxu0 %vm25_vm0, %v16_v3  ;;  %v1889_v10 = vld [vmem:[%s2442_s0 + $0x18] sm:$0xff]   ;;  %v1891_v12 = vld [vmem:[%s2442_s0 + $0x28] sm:$0xff]   ;;  %v1892_v13 = vld [vmem:[%s2442_s0 + $0x30] sm:$0xff]  }
   0x7   :  { %2161 = vmatpush3.bf16.msra.mxu0 %v1887_v2  ;;  %1997 = vmatprep.mubr.msk.f32.mxu0 %vm25_vm0, %v17_v4  ;;  %v1893_v14 = vld [vmem:[%s2442_s0 + $0x38] sm:$0xff]   ;;  %s2241_s0 = smov [#allocation2]  }
   0x8   :  { %2167 = vmatprep.subr.bf16.mxu0 %v1888_v5  ;;  %2155 = vmatprep.subr.bf16.mxu1 %v2293_v8  ;;  %s1702_s11 = sshll.u32 %s2241_s0, 4  ;;  %s1703_s11 = int_to_ptr.vmem [resolvable:$true] %s1702_s11 }
   0x9   :  { %2157 = vmatpush3.bf16.msra.mxu1 %v2293_v8  ;;  %s2217_s12 = scalar_lea.vmem %s1703_s11, 2048  ;;  %p2222_p1 = scmp.lt.s32.totalorder %s1703_s11, %s1703_s11 }
   0xa   :  { %1998 = vmatmul.mubr.msk.f32.gmra.mrb[2].mxu0 %vm25_vm0, %v18_v9  ;;  %2163 = vmatprep.subr.bf16.mxu1 %v2293_v8  ;;  %p2218_p0 = scmp.ne.s32.totalorder %s1703_s11, %s2217_s12  ;;  %p2223_p2 = scmp.lt.s32.totalorder %s2217_s12, %s2217_s12 }
   0xb   :  { %2014 = vmatprep.mubr.msk.f32.mxu0 %vm25_vm0, %v2270_v1 }
   0xc   :  { %p2224_p3 = por %p2223_p2, %p2222_p1 }
   0xe   :  { %2015 = vmatmul.mubr.msk.f32.vlgmr.msra.gmra.mrb[4].mxu0 %vm25_vm0, %v16_v3  ;;  %p2225_p4 = pnand %p2224_p3, %p2218_p0 }
   0xf   :  { %2169 = vmatpush3.bf16.msra.mxu0 %v1888_v5  ;;  %2017 = vmatprep.mubr.msk.f32.mxu0 %vm25_vm0, %v17_v4 }
  0x10   :  { %2175 = vmatprep.subr.bf16.mxu0 %v1889_v10 }
  0x12   :  { %2018 = vmatmul.mubr.msk.f32.gmra.mrb[6].mxu0 %vm25_vm0, %v18_v9 }
  0x13   :  { %2034 = vmatprep.mubr.msk.f32.mxu0 %vm25_vm0, %v2270_v1 }
  0x16   :  { %2035 = vmatmul.mubr.msk.f32.vlgmr.msra.gmra.mrb[8].mxu0 %vm25_vm0, %v16_v3 }
  0x17   :  { %2177 = vmatpush3.bf16.msra.mxu0 %v1889_v10  ;;  %2037 = vmatprep.mubr.msk.f32.mxu0 %vm25_vm0, %v17_v4 }
  0x18   :  { %2183 = vmatprep.subr.bf16.mxu0 %v1890_v11 }
  0x1a   :  { %2038 = vmatmul.mubr.msk.f32.gmra.mrb[10].mxu0 %vm25_vm0, %v18_v9 }
  0x1b   :  { %2054 = vmatprep.mubr.msk.f32.mxu0 %vm25_vm0, %v2270_v1 }
  0x1e   :  { %2055 = vmatmul.mubr.msk.f32.vlgmr.msra.gmra.mrb[12].mxu0 %vm25_vm0, %v16_v3 }
  0x1f   :  { %2185 = vmatpush3.bf16.msra.mxu0 %v1890_v11  ;;  %2057 = vmatprep.mubr.msk.f32.mxu0 %vm25_vm0, %v17_v4 }
  0x20   :  { %2191 = vmatprep.subr.bf16.mxu0 %v1891_v12 }
  0x22   :  { %2058 = vmatmul.mubr.msk.f32.gmra.mrb[14].mxu0 %vm25_vm0, %v18_v9 }
  0x23   :  { %2074 = vmatprep.mubr.msk.f32.mxu0 %vm25_vm0, %v2270_v1 }
  0x26   :  { %2075 = vmatmul.mubr.msk.f32.vlgmr.msra.gmra.mrb[16].mxu0 %vm25_vm0, %v16_v3 }
  0x27   :  { %2193 = vmatpush3.bf16.msra.mxu0 %v1891_v12  ;;  %2077 = vmatprep.mubr.msk.f32.mxu0 %vm25_vm0, %v17_v4 }
  0x28   :  { %2199 = vmatprep.subr.bf16.mxu0 %v1892_v13 }
  0x2a   :  { %2078 = vmatmul.mubr.msk.f32.gmra.mrb[18].mxu0 %vm25_vm0, %v18_v9 }
  0x2b   :  { %2094 = vmatprep.mubr.msk.f32.mxu0 %vm25_vm0, %v2270_v1 }
  0x2e   :  { %2095 = vmatmul.mubr.msk.f32.vlgmr.msra.gmra.mrb[20].mxu0 %vm25_vm0, %v16_v3 }
  0x2f   :  { %2201 = vmatpush3.bf16.msra.mxu0 %v1892_v13  ;;  %2097 = vmatprep.mubr.msk.f32.mxu0 %vm25_vm0, %v17_v4 }
  0x30   :  { %2207 = vmatprep.subr.bf16.mxu0 %v1893_v14 }
  0x32   :  { %2098 = vmatmul.mubr.msk.f32.gmra.mrb[22].mxu0 %vm25_vm0, %v18_v9 }
  0x33   :  { %2114 = vmatprep.mubr.msk.f32.mxu0 %vm25_vm0, %v2270_v1 }
  0x36   :  { %2115 = vmatmul.mubr.msk.f32.vlgmr.msra.gmra.mrb[24].mxu0 %vm25_vm0, %v16_v3 }
  0x37   :  { %2209 = vmatpush3.bf16.msra.mxu0 %v1893_v14  ;;  %2117 = vmatprep.mubr.msk.f32.mxu0 %vm25_vm0, %v17_v4 }
  0x3a   :  { %2118 = vmatmul.mubr.msk.f32.gmra.mrb[26].mxu0 %vm25_vm0, %v18_v9 }
  0x3b   :  { %2134 = vmatprep.mubr.msk.f32.mxu0 %vm25_vm0, %v2270_v1 }
  0x3e   :  { %2135 = vmatmul.mubr.msk.f32.vlgmr.msra.gmra.mrb[28].mxu0 %vm25_vm0, %v16_v3 }
  0x3f   :  { %2137 = vmatprep.mubr.msk.f32.mxu0 %vm25_vm0, %v17_v4 }
  0x42   :  { %2138 = vmatmul.mubr.msk.f32.gmra.mrb[30].mxu0 %vm25_vm0, %v18_v9 }
  0xd9   :  { %v1996_v15 = vpop.f32.mrb[0].mxu0 }
  0xda   :  { %v104_v16 = vpop.f32.mrb[1].mxu0 }
  0xdb   :  { %2004 = vmatprep.mubr.msk.f32.mxu1 %vm25_vm0, %v104_v16 }
  0xdc   :  { %2005 = vmatmul.mubr.msk.f32.vlgmr.msra.gmra.mrb[0].mxu1 %vm25_vm0, %v1996_v15 }
  0xdd   :  { %v1999_v17 = vpop.f32.mrb[2].mxu0  ;;  %2165 = vmatpush3.bf16.msra.mxu1 %v2293_v8 }
  0xde   :  { %v114_v18 = vpop.f32.mrb[3].mxu0  ;;  %2171 = vmatprep.subr.bf16.mxu1 %v2293_v8 }
  0xdf   :  { %2007 = vmatprep.mubr.msk.f32.mxu1 %vm25_vm0, %v114_v18 }
  0xe0   :  { %2008 = vmatmul.mubr.msk.f32.gmra.mrb[2].mxu1 %vm25_vm0, %v1999_v17 }
  0xe1   :  { %v2016_v19 = vpop.f32.mrb[4].mxu0 }
  0xe2   :  { %v312_v20 = vpop.f32.mrb[5].mxu0 }
  0xe3   :  { %2024 = vmatprep.mubr.msk.f32.mxu1 %vm25_vm0, %v312_v20 }
  0xe4   :  { %2025 = vmatmul.mubr.msk.f32.vlgmr.msra.gmra.mrb[4].mxu1 %vm25_vm0, %v2016_v19 }
  0xe5   :  { %v2019_v21 = vpop.f32.mrb[6].mxu0  ;;  %2173 = vmatpush3.bf16.msra.mxu1 %v2293_v8 }
  0xe6   :  { %v322_v22 = vpop.f32.mrb[7].mxu0  ;;  %2179 = vmatprep.subr.bf16.mxu1 %v2293_v8 }
  0xe7   :  { %2027 = vmatprep.mubr.msk.f32.mxu1 %vm25_vm0, %v322_v22 }
  0xe8   :  { %2028 = vmatmul.mubr.msk.f32.gmra.mrb[6].mxu1 %vm25_vm0, %v2019_v21 }
  0xe9   :  { %v2036_v23 = vpop.f32.mrb[8].mxu0 }
  0xea   :  { %v520_v24 = vpop.f32.mrb[9].mxu0 }
  0xeb   :  { %2044 = vmatprep.mubr.msk.f32.mxu1 %vm25_vm0, %v520_v24 }
  0xec   :  { %2045 = vmatmul.mubr.msk.f32.vlgmr.msra.gmra.mrb[8].mxu1 %vm25_vm0, %v2036_v23 }
  0xed   :  { %v2039_v25 = vpop.f32.mrb[10].mxu0  ;;  %2181 = vmatpush3.bf16.msra.mxu1 %v2293_v8 }
  0xee   :  { %v530_v26 = vpop.f32.mrb[11].mxu0  ;;  %2187 = vmatprep.subr.bf16.mxu1 %v2293_v8 }
  0xef   :  { %2047 = vmatprep.mubr.msk.f32.mxu1 %vm25_vm0, %v530_v26 }
  0xf0   :  { %2048 = vmatmul.mubr.msk.f32.gmra.mrb[10].mxu1 %vm25_vm0, %v2039_v25 }
  0xf1   :  { %v2056_v27 = vpop.f32.mrb[12].mxu0 }
  0xf2   :  { %v728_v28 = vpop.f32.mrb[13].mxu0 }
  0xf3   :  { %2064 = vmatprep.mubr.msk.f32.mxu1 %vm25_vm0, %v728_v28 }
  0xf4   :  { %2065 = vmatmul.mubr.msk.f32.vlgmr.msra.gmra.mrb[12].mxu1 %vm25_vm0, %v2056_v27 }
  0xf5   :  { %v2059_v29 = vpop.f32.mrb[14].mxu0  ;;  %2189 = vmatpush3.bf16.msra.mxu1 %v2293_v8 }
  0xf6   :  { %v738_v30 = vpop.f32.mrb[15].mxu0  ;;  %2195 = vmatprep.subr.bf16.mxu1 %v2293_v8 }
  0xf7   :  { %2067 = vmatprep.mubr.msk.f32.mxu1 %vm25_vm0, %v738_v30 }
  0xf8   :  { %2068 = vmatmul.mubr.msk.f32.gmra.mrb[14].mxu1 %vm25_vm0, %v2059_v29 }
  0xf9   :  { %v2076_v31 = vpop.f32.mrb[16].mxu0 }
  0xfa   :  { %v936_v32 = vpop.f32.mrb[17].mxu0 }
  0xfb   :  { %2084 = vmatprep.mubr.msk.f32.mxu1 %vm25_vm0, %v936_v32 }
  0xfc   :  { %2085 = vmatmul.mubr.msk.f32.vlgmr.msra.gmra.mrb[16].mxu1 %vm25_vm0, %v2076_v31 }
  0xfd   :  { %v2079_v33 = vpop.f32.mrb[18].mxu0  ;;  %2197 = vmatpush3.bf16.msra.mxu1 %v2293_v8 }
  0xfe   :  { %v946_v34 = vpop.f32.mrb[19].mxu0  ;;  %2203 = vmatprep.subr.bf16.mxu1 %v2293_v8 }
  0xff   :  { %2087 = vmatprep.mubr.msk.f32.mxu1 %vm25_vm0, %v946_v34 }
 0x100   :  { %2088 = vmatmul.mubr.msk.f32.gmra.mrb[18].mxu1 %vm25_vm0, %v2079_v33 }
 0x101   :  { %v2096_v35 = vpop.f32.mrb[20].mxu0 }
 0x102   :  { %v1144_v36 = vpop.f32.mrb[21].mxu0 }
 0x103   :  { %2104 = vmatprep.mubr.msk.f32.mxu1 %vm25_vm0, %v1144_v36 }
 0x104   :  { %2105 = vmatmul.mubr.msk.f32.vlgmr.msra.gmra.mrb[20].mxu1 %vm25_vm0, %v2096_v35 }
 0x105   :  { %v2099_v37 = vpop.f32.mrb[22].mxu0  ;;  %2205 = vmatpush3.bf16.msra.mxu1 %v2293_v8 }
 0x106   :  { %v1154_v38 = vpop.f32.mrb[23].mxu0  ;;  %2211 = vmatprep.subr.bf16.mxu1 %v2293_v8 }
 0x107   :  { %2107 = vmatprep.mubr.msk.f32.mxu1 %vm25_vm0, %v1154_v38 }
 0x108   :  { %2108 = vmatmul.mubr.msk.f32.gmra.mrb[22].mxu1 %vm25_vm0, %v2099_v37 }
 0x109   :  { %v2116_v39 = vpop.f32.mrb[24].mxu0 }
 0x10a   :  { %v1352_v40 = vpop.f32.mrb[25].mxu0 }
 0x10b   :  { %2124 = vmatprep.mubr.msk.f32.mxu1 %vm25_vm0, %v1352_v40 }
 0x10c   :  { %2125 = vmatmul.mubr.msk.f32.vlgmr.msra.gmra.mrb[24].mxu1 %vm25_vm0, %v2116_v39 }
 0x10d   :  { %v2119_v41 = vpop.f32.mrb[26].mxu0  ;;  %2213 = vmatpush3.bf16.msra.mxu1 %v2293_v8 }
 0x10e   :  { %v1362_v42 = vpop.f32.mrb[27].mxu0 }
 0x10f   :  { %2127 = vmatprep.mubr.msk.f32.mxu1 %vm25_vm0, %v1362_v42 }
 0x110   :  { %2128 = vmatmul.mubr.msk.f32.gmra.mrb[26].mxu1 %vm25_vm0, %v2119_v41 }
 0x111   :  { %v2136_v43 = vpop.f32.mrb[28].mxu0 }
 0x112   :  { %v1560_v44 = vpop.f32.mrb[29].mxu0 }
 0x113   :  { %2144 = vmatprep.mubr.msk.f32.mxu1 %vm25_vm0, %v1560_v44 }
 0x114   :  { %2145 = vmatmul.mubr.msk.f32.vlgmr.msra.gmra.mrb[28].mxu1 %vm25_vm0, %v2136_v43 }
 0x115   :  { %v2139_v45 = vpop.f32.mrb[30].mxu0 }
 0x116   :  { %v1570_v46 = vpop.f32.mrb[31].mxu0 }
 0x117   :  { %2147 = vmatprep.mubr.msk.f32.mxu1 %vm25_vm0, %v1570_v46 }
 0x118   :  { %2148 = vmatmul.mubr.msk.f32.gmra.mrb[30].mxu1 %vm25_vm0, %v2139_v45 }
 0x1af   :  { %v2006_v47 = vpop.f32.mrb[0].mxu1 }
 0x1b0   :  { %v1824_v48 = vpack.c.bf16 %v2006_v47, %v2006_v47  ;;  %v201_v49 = vpop.f32.mrb[1].mxu1 }
 0x1b1   :  { %v1823_v50 = vpack.c.bf16 %v201_v49, %v201_v49 }
 0x1b2   :  { %238 = vst.msk [vmem:[#allocation2 + $0x4] sm:$0xf] %vm236_vm1, %v1824_v48 }
 0x1b3   :  { %237 = vst.msk [vmem:[#allocation2] sm:$0xf] %vm236_vm1, %v1823_v50  ;;  %v2009_v51 = vpop.f32.mrb[2].mxu1 }
 0x1b4   :  { %v1826_v52 = vpack.c.bf16 %v2009_v51, %v2009_v51  ;;  %v211_v53 = vpop.f32.mrb[3].mxu1 }
 0x1b5   :  { %v1825_v54 = vpack.c.bf16 %v211_v53, %v211_v53 }
 0x1b6   :  { %240 = vst.msk [vmem:[#allocation2 + $0xc] sm:$0xf] %vm236_vm1, %v1826_v52 }
 0x1b7   :  { %239 = vst.msk [vmem:[#allocation2 + $0x8] sm:$0xf] %vm236_vm1, %v1825_v54  ;;  %v2026_v55 = vpop.f32.mrb[4].mxu1 }
 0x1b8   :  { %v1828_v56 = vpack.c.bf16 %v2026_v55, %v2026_v55  ;;  %v409_v57 = vpop.f32.mrb[5].mxu1 }
 0x1b9   :  { %v1827_v58 = vpack.c.bf16 %v409_v57, %v409_v57 }
 0x1ba   :  { %446 = vst.msk [vmem:[#allocation2 + $0x14] sm:$0xf] %vm236_vm1, %v1828_v56 }
 0x1bb   :  { %445 = vst.msk [vmem:[#allocation2 + $0x10] sm:$0xf] %vm236_vm1, %v1827_v58  ;;  %v2029_v59 = vpop.f32.mrb[6].mxu1 }
 0x1bc   :  { %v1830_v60 = vpack.c.bf16 %v2029_v59, %v2029_v59  ;;  %v419_v61 = vpop.f32.mrb[7].mxu1 }
 0x1bd   :  { %v1829_v62 = vpack.c.bf16 %v419_v61, %v419_v61 }
 0x1be   :  { %448 = vst.msk [vmem:[#allocation2 + $0x1c] sm:$0xf] %vm236_vm1, %v1830_v60 }
 0x1bf   :  { %447 = vst.msk [vmem:[#allocation2 + $0x18] sm:$0xf] %vm236_vm1, %v1829_v62  ;;  %v2046_v63 = vpop.f32.mrb[8].mxu1 }
 0x1c0   :  { %v1832_v0 = vpack.c.bf16 %v2046_v63, %v2046_v63  ;;  %v617_v1 = vpop.f32.mrb[9].mxu1 }
 0x1c1   :  { %v1831_v2 = vpack.c.bf16 %v617_v1, %v617_v1 }
 0x1c2   :  { %654 = vst.msk [vmem:[#allocation2 + $0x24] sm:$0xf] %vm236_vm1, %v1832_v0 }
 0x1c3   :  { %653 = vst.msk [vmem:[#allocation2 + $0x20] sm:$0xf] %vm236_vm1, %v1831_v2  ;;  %v2049_v3 = vpop.f32.mrb[10].mxu1 }
 0x1c4   :  { %v1834_v4 = vpack.c.bf16 %v2049_v3, %v2049_v3  ;;  %v627_v5 = vpop.f32.mrb[11].mxu1 }
 0x1c5   :  { %v1833_v6 = vpack.c.bf16 %v627_v5, %v627_v5 }
 0x1c6   :  { %656 = vst.msk [vmem:[#allocation2 + $0x2c] sm:$0xf] %vm236_vm1, %v1834_v4 }
 0x1c7   :  { %655 = vst.msk [vmem:[#allocation2 + $0x28] sm:$0xf] %vm236_vm1, %v1833_v6  ;;  %v2066_v7 = vpop.f32.mrb[12].mxu1 }
 0x1c8   :  { %v1836_v8 = vpack.c.bf16 %v2066_v7, %v2066_v7  ;;  %v825_v9 = vpop.f32.mrb[13].mxu1 }
 0x1c9   :  { %v1835_v10 = vpack.c.bf16 %v825_v9, %v825_v9 }
 0x1ca   :  { %862 = vst.msk [vmem:[#allocation2 + $0x34] sm:$0xf] %vm236_vm1, %v1836_v8 }
 0x1cb   :  { %861 = vst.msk [vmem:[#allocation2 + $0x30] sm:$0xf] %vm236_vm1, %v1835_v10  ;;  %v2069_v11 = vpop.f32.mrb[14].mxu1 }
 0x1cc   :  { %v1838_v12 = vpack.c.bf16 %v2069_v11, %v2069_v11  ;;  %v835_v13 = vpop.f32.mrb[15].mxu1 }
 0x1cd   :  { %v1837_v14 = vpack.c.bf16 %v835_v13, %v835_v13 }
 0x1ce   :  { %864 = vst.msk [vmem:[#allocation2 + $0x3c] sm:$0xf] %vm236_vm1, %v1838_v12 }
 0x1cf   :  { %863 = vst.msk [vmem:[#allocation2 + $0x38] sm:$0xf] %vm236_vm1, %v1837_v14  ;;  %v2086_v15 = vpop.f32.mrb[16].mxu1 }
 0x1d0   :  { %v1840_v16 = vpack.c.bf16 %v2086_v15, %v2086_v15  ;;  %v1033_v17 = vpop.f32.mrb[17].mxu1 }
 0x1d1   :  { %v1839_v18 = vpack.c.bf16 %v1033_v17, %v1033_v17 }
 0x1d2   :  { %1070 = vst.msk [vmem:[#allocation2 + $0x44] sm:$0xf] %vm236_vm1, %v1840_v16 }
 0x1d3   :  { %1069 = vst.msk [vmem:[#allocation2 + $0x40] sm:$0xf] %vm236_vm1, %v1839_v18  ;;  %v2089_v19 = vpop.f32.mrb[18].mxu1 }
 0x1d4   :  { %v1842_v20 = vpack.c.bf16 %v2089_v19, %v2089_v19  ;;  %v1043_v21 = vpop.f32.mrb[19].mxu1 }
 0x1d5   :  { %v1841_v22 = vpack.c.bf16 %v1043_v21, %v1043_v21 }
 0x1d6   :  { %1072 = vst.msk [vmem:[#allocation2 + $0x4c] sm:$0xf] %vm236_vm1, %v1842_v20 }
 0x1d7   :  { %1071 = vst.msk [vmem:[#allocation2 + $0x48] sm:$0xf] %vm236_vm1, %v1841_v22  ;;  %v2106_v23 = vpop.f32.mrb[20].mxu1 }
 0x1d8   :  { %v1844_v24 = vpack.c.bf16 %v2106_v23, %v2106_v23  ;;  %v1241_v25 = vpop.f32.mrb[21].mxu1 }
 0x1d9   :  { %v1843_v26 = vpack.c.bf16 %v1241_v25, %v1241_v25 }
 0x1da   :  { %1278 = vst.msk [vmem:[#allocation2 + $0x54] sm:$0xf] %vm236_vm1, %v1844_v24 }
 0x1db   :  { %1277 = vst.msk [vmem:[#allocation2 + $0x50] sm:$0xf] %vm236_vm1, %v1843_v26  ;;  %v2109_v27 = vpop.f32.mrb[22].mxu1 }
 0x1dc   :  { %v1846_v28 = vpack.c.bf16 %v2109_v27, %v2109_v27  ;;  %v1251_v29 = vpop.f32.mrb[23].mxu1 }
 0x1dd   :  { %v1845_v30 = vpack.c.bf16 %v1251_v29, %v1251_v29 }
 0x1de   :  { %1280 = vst.msk [vmem:[#allocation2 + $0x5c] sm:$0xf] %vm236_vm1, %v1846_v28 }
 0x1df   :  { %1279 = vst.msk [vmem:[#allocation2 + $0x58] sm:$0xf] %vm236_vm1, %v1845_v30  ;;  %v2126_v31 = vpop.f32.mrb[24].mxu1 }
 0x1e0   :  { %v1848_v32 = vpack.c.bf16 %v2126_v31, %v2126_v31  ;;  %v1449_v33 = vpop.f32.mrb[25].mxu1 }
 0x1e1   :  { %v1847_v34 = vpack.c.bf16 %v1449_v33, %v1449_v33 }
 0x1e2   :  { %1486 = vst.msk [vmem:[#allocation2 + $0x64] sm:$0xf] %vm236_vm1, %v1848_v32 }
 0x1e3   :  { %1485 = vst.msk [vmem:[#allocation2 + $0x60] sm:$0xf] %vm236_vm1, %v1847_v34  ;;  %v2129_v35 = vpop.f32.mrb[26].mxu1 }
 0x1e4   :  { %v1850_v36 = vpack.c.bf16 %v2129_v35, %v2129_v35  ;;  %v1459_v37 = vpop.f32.mrb[27].mxu1 }
 0x1e5   :  { %v1849_v38 = vpack.c.bf16 %v1459_v37, %v1459_v37 }
 0x1e6   :  { %1488 = vst.msk [vmem:[#allocation2 + $0x6c] sm:$0xf] %vm236_vm1, %v1850_v36 }
 0x1e7   :  { %1487 = vst.msk [vmem:[#allocation2 + $0x68] sm:$0xf] %vm236_vm1, %v1849_v38  ;;  %v2146_v39 = vpop.f32.mrb[28].mxu1 }
 0x1e8   :  { %v1852_v40 = vpack.c.bf16 %v2146_v39, %v2146_v39  ;;  %v1657_v41 = vpop.f32.mrb[29].mxu1 }
 0x1e9   :  { %v1851_v42 = vpack.c.bf16 %v1657_v41, %v1657_v41 }
 0x1ea   :  { %1694 = vst.msk [vmem:[#allocation2 + $0x74] sm:$0xf] %vm236_vm1, %v1852_v40 }
 0x1eb   :  { %1693 = vst.msk [vmem:[#allocation2 + $0x70] sm:$0xf] %vm236_vm1, %v1851_v42  ;;  %v2149_v43 = vpop.f32.mrb[30].mxu1 }
 0x1ec   :  { %v1854_v44 = vpack.c.bf16 %v2149_v43, %v2149_v43  ;;  %v1667_v45 = vpop.f32.mrb[31].mxu1 }
 0x1ed   :  { %v1853_v46 = vpack.c.bf16 %v1667_v45, %v1667_v45 }
 0x1ee   :  { %1696 = vst.msk [vmem:[#allocation2 + $0x7c] sm:$0xf] %vm236_vm1, %v1854_v44 }
 0x1ef   :  { %1695 = vst.msk [vmem:[#allocation2 + $0x78] sm:$0xf] %vm236_vm1, %v1853_v46 }
 0x1f0   :  { %2228 = shalt.err (!%p2225_p4)
}
 0x1f1   :  { %s2229_s15 = scalar_lea.hbm %s2445_s3, 2048 }
 0x1f2   :  { %p2230_p5 = scmp.ne.s32.totalorder %s2445_s3, %s2229_s15  ;;  %p2233_p6 = scmp.lt.u32.totalorder %s2229_s15, %s2445_s3 }
 0x1f4   :  { %p2235_p7 = pnand %p2233_p6, %p2230_p5 }
 0x1f6   :  { %2238 = shalt.err (!%p2235_p7)
}
 0x1f7   :  { %s2242_s20 = smov 64   ;;  %s2243_s21 = smov 4  }
 0x1f8   :  { %1708 = dma.vmem_to_hbm [thread:$0]  %s1703_s11, 2048, %s2445_s3, [#allocation3], %s2242_s20, %s2242_s20, %s2243_s21  }
 0x1f9   :  { %2239 = dma.done.wait [#allocation3], 2048  }
 0x1fa   :  { %2240 = vsyncadd [#allocation3], 4294965248 }
 0x1fb   :  { %1712 = vsyncpa [#allocation3], 1 }

</bundles_post_ra>
